<compile_context>
chip_gen: v7x
topology: tpu7x:2x2x1
jax: 0.10.0
libtpu: 0.0.40
codegen_flags: <defaults>
</compile_context>

<pallas_src>
import functools

import jax
import jax.numpy as jnp
from jax.experimental import pallas as pl
from jax.experimental.pallas import tpu as pltpu


def _round_up(x, m):
    return ((x + m - 1) // m) * m


# ----------------------------------------------------------------------------
# The single fused Pallas kernel:  conv layers -> maxpool -> dense1+SELU -> out
# ----------------------------------------------------------------------------
def _fused_forward_kernel(*refs, n_conv, pool_shift):
    x_ref = refs[0]
    o_ref = refs[-1]

    h = x_ref[...]
    pos = 1
    # PhyloConv1D layers: each is one MXU matmul against a precomputed
    # selection/conv matrix, + bias + ReLU.
    for _ in range(n_conv):
        A = refs[pos][...]
        b = refs[pos + 1][...]
        pos += 2
        h = jnp.maximum(
            jnp.dot(h, A, preferred_element_type=jnp.float32) + b, 0.0)

    # MaxPool1d(kernel_size=2): the last conv layer's output columns were
    # permuted at prepare time so the pooled value for column j (j < d1_in)
    # is max(h[:, j], h[:, j + pool_shift]).  Roll by half the (even) padded
    # width pairs j <-> j+pool_shift regardless of roll direction.
    h = jnp.maximum(h, pltpu.roll(h, shift=pool_shift, axis=1))

    w1 = refs[pos][...]
    b1 = refs[pos + 1][...]
    w2 = refs[pos + 2][...]
    b2 = refs[pos + 3][...]

    z = jnp.dot(h, w1, preferred_element_type=jnp.float32) + b1
    alpha = 1.6732632423543772
    scale = 1.0507009873554805
    z = scale * jnp.where(z > 0.0, z,
                          alpha * (jnp.exp(jnp.minimum(z, 0.0)) - 1.0))
    # TODO(synk): Dropout(p=0.25) is identity in eval mode.
    o_ref[...] = (jnp.dot(z, w2, preferred_element_type=jnp.float32)
                  + b2).astype(o_ref.dtype)


# ----------------------------------------------------------------------------
# One-time precompute (input independent): distances, top_k, folded selection
# matrices, coordinate-branch propagation, pooling permutation, padding.
# ----------------------------------------------------------------------------
def _sq_dists(crd):
    """crd: (P, C, F) -> per-channel squared pairwise feature distances (C,F,F)."""
    pts = jnp.transpose(crd, (1, 2, 0))              # (C, F, P)
    sq = jnp.sum(pts * pts, axis=-1)                 # (C, F)
    gram = jnp.einsum("cfp,cgp->cfg", pts, pts)      # (C, F, F)
    d2 = sq[:, :, None] + sq[:, None, :] - 2.0 * gram
    return jnp.maximum(d2, 0.0)                      # sqrt dropped: top_k invariant


def _phylo_conv_ref(data, idx, W, b):
    """Gather-based PhyloConv1D (PyTorch semantics).

    data (N, C_in, F), idx (C_in, F, K), W (C_out, C_in, K), b (C_out,).
    """
    C_in = data.shape[1]
    gathered = data[:, jnp.arange(C_in)[:, None, None], idx]   # (N, C_in, F, K)
    out = jnp.einsum("ncfk,ock->nof", gathered, W) + b[None, :, None]
    return jnp.maximum(out, 0.0)


def _build_layer_matrix(W, b, idx, F):
    """Fold neighbor-gather + Conv1d(kernel=K, stride=K) into one matrix.

    A[ci*F + j, co*F + f] = sum_k W[co, ci, k] * (idx[ci, f, k] == j)
    so that  y_flat = x_flat @ A + bias_flat  reproduces the PyTorch layer.
    """
    C_out, C_in, K = W.shape
    onehot = jax.nn.one_hot(idx, F, dtype=jnp.float32)     # (C_in, F, K, F_src)
    A = jnp.einsum("cfkj,ock->cjof", onehot, W)            # (C_in, F_src, C_out, F)
    A = A.reshape(C_in * F, C_out * F)
    bias = jnp.broadcast_to(b[:, None], (C_out, F)).reshape(C_out * F)
    return A, bias


def prepare_params(raw, num_features, out_features):
    F = num_features
    F_half = F // 2
    crd = raw["coordinates"]                                # (P, 1, F)
    n_conv = len(raw["conv"])

    layers = []
    C_in = 1
    in_w = _round_up(C_in * F, 128)
    first_in_w = in_w
    pool_shift = None

    for li, (W, b, K) in enumerate(raw["conv"]):
        C_out = W.shape[0]
        d2 = _sq_dists(crd)                                 # (C_in, F, F)
        _, idx = jax.lax.top_k(-d2, K)                      # (C_in, F, K)
        A, bias = _build_layer_matrix(W, b, idx, F)

        # Coordinate branch: same transform, precomputed once (input independent).
        crd = _phylo_conv_ref(crd, idx, W, b)               # (P, C_out, F)

        out_w = _round_up(C_out * F, 128)
        is_last = (li == n_conv - 1)
        if is_last:
            # Permute output columns so MaxPool1d(2) becomes a pairwise max
            # between column j and column j + out_w//2 inside the kernel.
            half = out_w // 2
            n_pool = C_out * F_half
            A3 = A.reshape(C_in * F, C_out, F)
            b3 = bias.reshape(C_out, F)
            even_A = A3[:, :, 0:2 * F_half:2].reshape(C_in * F, n_pool)
            odd_A = A3[:, :, 1:2 * F_half:2].reshape(C_in * F, n_pool)
            even_b = b3[:, 0:2 * F_half:2].reshape(n_pool)
            odd_b = b3[:, 1:2 * F_half:2].reshape(n_pool)
            Ap = jnp.zeros((in_w, out_w), jnp.float32)
            Ap = Ap.at[:C_in * F, :n_pool].set(even_A)
            Ap = Ap.at[:C_in * F, half:half + n_pool].set(odd_A)
            bp = jnp.zeros((1, out_w), jnp.float32)
            bp = bp.at[0, :n_pool].set(even_b)
            bp = bp.at[0, half:half + n_pool].set(odd_b)
            pool_shift = half
        else:
            Ap = jnp.zeros((in_w, out_w), jnp.float32)
            Ap = Ap.at[:C_in * F, :C_out * F].set(A)
            bp = jnp.zeros((1, out_w), jnp.float32)
            bp = bp.at[0, :C_out * F].set(bias)
        layers.append((Ap, bp))
        C_in = C_out
        in_w = out_w

    # Dense tail, padded once.  Rows of W1 line up with the permuted/pooled
    # column layout (pooled index c*F_half + g sits at column c*F_half + g).
    C_last = C_in
    d1_in = C_last * F_half
    Hp = _round_up(64, 128)
    Np = _round_up(out_features, 128)
    W1p = jnp.zeros((in_w, Hp), jnp.float32).at[:d1_in, :64].set(raw["W1"].T)
    b1p = jnp.zeros((1, Hp), jnp.float32).at[0, :64].set(raw["b1"])
    W2p = jnp.zeros((Hp, Np), jnp.float32).at[:64, :out_features].set(raw["W2"].T)
    b2p = jnp.zeros((1, Np), jnp.float32).at[0, :out_features].set(raw["b2"])

    return {
        "layers": layers,
        "first_in_w": first_in_w,
        "pool_shift": pool_shift,
        "num_features": F,
        "out_features": out_features,
        "W1p": W1p, "b1p": b1p, "W2p": W2p, "b2p": b2p,
    }


# ----------------------------------------------------------------------------
# Forward pass: ONE fused Pallas kernel, grid over the batch dimension only.
# ----------------------------------------------------------------------------
def phcnn_forward(x, params):
    B = x.shape[0]
    F = params["num_features"]

    # M padding consistent with the tile actually used: TM always divides Mp.
    Mp0 = _round_up(B, 8)
    TM = min(128, Mp0)
    Mp = _round_up(B, TM)
    assert Mp % TM == 0

    W0 = params["first_in_w"]
    xp = jnp.zeros((Mp, W0), jnp.float32).at[:B, :F].set(x.astype(jnp.float32))

    weight_args = []
    in_specs = [pl.BlockSpec((TM, W0), lambda i: (i, 0))]
    for (Ap, bp) in params["layers"]:
        weight_args += [Ap, bp]
        in_specs += [pl.BlockSpec(Ap.shape, lambda i: (0, 0)),
                     pl.BlockSpec(bp.shape, lambda i: (0, 0))]
    tail = (params["W1p"], params["b1p"], params["W2p"], params["b2p"])
    weight_args += list(tail)
    in_specs += [pl.BlockSpec(w.shape, lambda i: (0, 0)) for w in tail]

    Np = params["W2p"].shape[1]
    out_p = pl.pallas_call(
        functools.partial(_fused_forward_kernel,
                          n_conv=len(params["layers"]),
                          pool_shift=params["pool_shift"]),
        grid=(Mp // TM,),
        in_specs=in_specs,
        out_specs=pl.BlockSpec((TM, Np), lambda i: (i, 0)),
        out_shape=jax.ShapeDtypeStruct((Mp, Np), jnp.float32),
        compiler_params=pltpu.CompilerParams(
            dimension_semantics=("parallel",),
            vmem_limit_bytes=32 * 1024 * 1024),
    )(xp, *weight_args)
    return out_p[:B, :params["out_features"]]


# ----------------------------------------------------------------------------
# Pure-JAX reference (gather-based, PyTorch semantics) for a sanity check.
# ----------------------------------------------------------------------------
def reference_forward(x, raw, num_features, out_features):
    F = num_features
    X = x[:, None, :].astype(jnp.float32)          # (B, 1, F)
    crd = raw["coordinates"]                        # (P, 1, F)
    for (W, b, K) in raw["conv"]:
        d2 = _sq_dists(crd)
        _, idx = jax.lax.top_k(-d2, K)
        X = _phylo_conv_ref(X, idx, W, b)
        crd = _phylo_conv_ref(crd, idx, W, b)
    B, C, _ = X.shape
    Fh = F // 2
    pooled = jnp.max(X[:, :, :2 * Fh].reshape(B, C, Fh, 2), axis=-1)
    flat = pooled.reshape(B, C * Fh)
    h = flat @ raw["W1"].T + raw["b1"]
    alpha = 1.6732632423543772
    scale = 1.0507009873554805
    h = scale * jnp.where(h > 0.0, h, alpha * (jnp.exp(jnp.minimum(h, 0.0)) - 1.0))
    return h @ raw["W2"].T + raw["b2"]


# ----------------------------------------------------------------------------
# Deterministic parameter / input construction
# ----------------------------------------------------------------------------
def make_raw_params(key, num_features, nb_filters, nb_neighbors, out_features):
    P = min(306, num_features)
    keys = jax.random.split(key, 3 + 2 * len(nb_filters) + 4)
    ki = iter(range(len(keys)))

    # TODO(synk): stand-in for cophenetic-matrix + PCA coordinates.
    coordinates = 0.1 * jax.random.normal(
        keys[next(ki)], (P, 1, num_features), dtype=jnp.float32)

    conv = []
    in_ch = 1
    for nf, nn_k in zip(nb_filters, nb_neighbors):
        W = 0.2 * jax.random.normal(
            keys[next(ki)], (nf, in_ch, nn_k), dtype=jnp.float32)
        b = 0.05 * jax.random.normal(keys[next(ki)], (nf,), dtype=jnp.float32)
        conv.append((W, b, nn_k))
        in_ch = nf

    dense1_in = nb_filters[-1] * (num_features // 2)
    W1 = 0.1 * jax.random.normal(keys[next(ki)], (64, dense1_in), jnp.float32)
    b1 = 0.05 * jax.random.normal(keys[next(ki)], (64,), jnp.float32)
    W2 = 0.1 * jax.random.normal(keys[next(ki)], (out_features, 64), jnp.float32)
    b2 = 0.05 * jax.random.normal(keys[next(ki)], (out_features,), jnp.float32)

    return {
        "coordinates": coordinates,
        "conv": conv,
        "W1": W1, "b1": b1,
        "W2": W2, "b2": b2,
    }


if __name__ == "__main__":
    batch = 2
    num_features = 16          # number of tree leaves
    nb_filters = (4, 8)
    nb_neighbors = (3, 3)
    out_features = 5

    key = jax.random.PRNGKey(0)
    k_params, k_x = jax.random.split(key)
    raw = make_raw_params(k_params, num_features, nb_filters, nb_neighbors,
                          out_features)
    params = prepare_params(raw, num_features, out_features)
    x = jax.random.normal(k_x, (batch, num_features), dtype=jnp.float32)

    fwd = jax.jit(lambda xx: phcnn_forward(xx, params))
    out = jax.block_until_ready(fwd(x))
    assert out.shape == (batch, out_features), out.shape
    assert bool(jnp.all(jnp.isfinite(out)))

    # Sanity check against the gather-based pure-JAX reference (tolerance
    # accounts for MXU/XLA matmul precision differences).
    ref = reference_forward(x, raw, num_features, out_features)
    assert bool(jnp.allclose(out, ref, rtol=2e-2, atol=2e-2)), (out, ref)

    print("KERNEL_OK")
</pallas_src>

<mosaic_0001>
module attributes {stable_mosaic.version = 11 : i64} {
  func.func @_fused_forward_kernel(%arg0: i32, %arg1: memref<8x128xf32, #tpu.memory_space<vmem>>, %arg2: memref<128x128xf32, #tpu.memory_space<vmem>>, %arg3: memref<1x128xf32, #tpu.memory_space<vmem>>, %arg4: memref<128x128xf32, #tpu.memory_space<vmem>>, %arg5: memref<1x128xf32, #tpu.memory_space<vmem>>, %arg6: memref<128x128xf32, #tpu.memory_space<vmem>>, %arg7: memref<1x128xf32, #tpu.memory_space<vmem>>, %arg8: memref<128x128xf32, #tpu.memory_space<vmem>>, %arg9: memref<1x128xf32, #tpu.memory_space<vmem>>, %arg10: memref<8x128xf32, #tpu.memory_space<vmem>>) attributes {dimension_semantics = [#tpu.dimension_semantics<parallel>], iteration_bounds = array<i64: 1>, scalar_prefetch = 0 : i64, scratch_operands = 0 : i64, tpu.core_type = #tpu.core_type<tc>, window_params = [{transform_indices = @transform_0, window_bounds = array<i64: 8, 128>}, {pipeline_mode = #tpu.pipeline_mode<synchronous>, transform_indices = @transform_1, window_bounds = array<i64: 128, 128>}, {pipeline_mode = #tpu.pipeline_mode<synchronous>, transform_indices = @transform_2, window_bounds = array<i64: 1, 128>}, {pipeline_mode = #tpu.pipeline_mode<synchronous>, transform_indices = @transform_3, window_bounds = array<i64: 128, 128>}, {pipeline_mode = #tpu.pipeline_mode<synchronous>, transform_indices = @transform_4, window_bounds = array<i64: 1, 128>}, {pipeline_mode = #tpu.pipeline_mode<synchronous>, transform_indices = @transform_5, window_bounds = array<i64: 128, 128>}, {pipeline_mode = #tpu.pipeline_mode<synchronous>, transform_indices = @transform_6, window_bounds = array<i64: 1, 128>}, {pipeline_mode = #tpu.pipeline_mode<synchronous>, transform_indices = @transform_7, window_bounds = array<i64: 128, 128>}, {pipeline_mode = #tpu.pipeline_mode<synchronous>, transform_indices = @transform_8, window_bounds = array<i64: 1, 128>}, {transform_indices = @transform_9, window_bounds = array<i64: 8, 128>}]} {
    %c0 = arith.constant 0 : index
    %c0_0 = arith.constant 0 : index
    %0 = vector.load %arg1[%c0, %c0_0] : memref<8x128xf32, #tpu.memory_space<vmem>>, vector<8x128xf32>
    %c0_1 = arith.constant 0 : index
    %c0_2 = arith.constant 0 : index
    %1 = vector.load %arg2[%c0_1, %c0_2] : memref<128x128xf32, #tpu.memory_space<vmem>>, vector<128x128xf32>
    %c0_3 = arith.constant 0 : index
    %c0_4 = arith.constant 0 : index
    %2 = vector.load %arg3[%c0_3, %c0_4] : memref<1x128xf32, #tpu.memory_space<vmem>>, vector<1x128xf32>
    %cst = arith.constant dense<0.000000e+00> : vector<8x128xf32>
    %3 = tpu.matmul %0, %1, %cst {dimension_numbers = #tpu.dot_dimension_numbers<[1], [0], [0], [1], [0, 0, 1, 1], [], []>} : vector<8x128xf32>, vector<128x128xf32>, vector<8x128xf32> -> vector<8x128xf32>
    %4 = vector.broadcast %2 : vector<1x128xf32> to vector<8x128xf32>
    %5 = arith.addf %3, %4 : vector<8x128xf32>
    %cst_5 = arith.constant 0.000000e+00 : f32
    %6 = vector.broadcast %cst_5 : f32 to vector<8x128xf32>
    %7 = arith.maximumf %5, %6 : vector<8x128xf32>
    %c0_6 = arith.constant 0 : index
    %c0_7 = arith.constant 0 : index
    %8 = vector.load %arg4[%c0_6, %c0_7] : memref<128x128xf32, #tpu.memory_space<vmem>>, vector<128x128xf32>
    %c0_8 = arith.constant 0 : index
    %c0_9 = arith.constant 0 : index
    %9 = vector.load %arg5[%c0_8, %c0_9] : memref<1x128xf32, #tpu.memory_space<vmem>>, vector<1x128xf32>
    %cst_10 = arith.constant dense<0.000000e+00> : vector<8x128xf32>
    %10 = tpu.matmul %7, %8, %cst_10 {dimension_numbers = #tpu.dot_dimension_numbers<[1], [0], [0], [1], [0, 0, 1, 1], [], []>} : vector<8x128xf32>, vector<128x128xf32>, vector<8x128xf32> -> vector<8x128xf32>
    %11 = vector.broadcast %9 : vector<1x128xf32> to vector<8x128xf32>
    %12 = arith.addf %10, %11 : vector<8x128xf32>
    %cst_11 = arith.constant 0.000000e+00 : f32
    %13 = vector.broadcast %cst_11 : f32 to vector<8x128xf32>
    %14 = arith.maximumf %12, %13 : vector<8x128xf32>
    %c64_i32 = arith.constant 64 : i32
    %15 = tpu.dynamic_rotate %14 by %c64_i32 dim 1 : vector<8x128xf32>, i32 -> vector<8x128xf32>
    %16 = arith.maximumf %14, %15 : vector<8x128xf32>
    %c0_12 = arith.constant 0 : index
    %c0_13 = arith.constant 0 : index
    %17 = vector.load %arg6[%c0_12, %c0_13] : memref<128x128xf32, #tpu.memory_space<vmem>>, vector<128x128xf32>
    %c0_14 = arith.constant 0 : index
    %c0_15 = arith.constant 0 : index
    %18 = vector.load %arg7[%c0_14, %c0_15] : memref<1x128xf32, #tpu.memory_space<vmem>>, vector<1x128xf32>
    %c0_16 = arith.constant 0 : index
    %c0_17 = arith.constant 0 : index
    %19 = vector.load %arg8[%c0_16, %c0_17] : memref<128x128xf32, #tpu.memory_space<vmem>>, vector<128x128xf32>
    %c0_18 = arith.constant 0 : index
    %c0_19 = arith.constant 0 : index
    %20 = vector.load %arg9[%c0_18, %c0_19] : memref<1x128xf32, #tpu.memory_space<vmem>>, vector<1x128xf32>
    %cst_20 = arith.constant dense<0.000000e+00> : vector<8x128xf32>
    %21 = tpu.matmul %16, %17, %cst_20 {dimension_numbers = #tpu.dot_dimension_numbers<[1], [0], [0], [1], [0, 0, 1, 1], [], []>} : vector<8x128xf32>, vector<128x128xf32>, vector<8x128xf32> -> vector<8x128xf32>
    %22 = vector.broadcast %18 : vector<1x128xf32> to vector<8x128xf32>
    %23 = arith.addf %21, %22 : vector<8x128xf32>
    %cst_21 = arith.constant 0.000000e+00 : f32
    %24 = vector.broadcast %cst_21 : f32 to vector<8x128xf32>
    %25 = arith.cmpf ogt, %23, %24 : vector<8x128xf32>
    %cst_22 = arith.constant 0.000000e+00 : f32
    %26 = vector.broadcast %cst_22 : f32 to vector<8x128xf32>
    %27 = arith.minimumf %23, %26 : vector<8x128xf32>
    %28 = math.exp %27 : vector<8x128xf32>
    %cst_23 = arith.constant 1.000000e+00 : f32
    %29 = vector.broadcast %cst_23 : f32 to vector<8x128xf32>
    %30 = arith.subf %28, %29 : vector<8x128xf32>
    %cst_24 = arith.constant 1.67326319 : f32
    %31 = vector.broadcast %cst_24 : f32 to vector<8x128xf32>
    %32 = arith.mulf %31, %30 : vector<8x128xf32>
    %33 = arith.select %25, %23, %32 : vector<8x128xi1>, vector<8x128xf32>
    %cst_25 = arith.constant 1.05070102 : f32
    %34 = vector.broadcast %cst_25 : f32 to vector<8x128xf32>
    %35 = arith.mulf %34, %33 : vector<8x128xf32>
    %cst_26 = arith.constant dense<0.000000e+00> : vector<8x128xf32>
    %36 = tpu.matmul %35, %19, %cst_26 {dimension_numbers = #tpu.dot_dimension_numbers<[1], [0], [0], [1], [0, 0, 1, 1], [], []>} : vector<8x128xf32>, vector<128x128xf32>, vector<8x128xf32> -> vector<8x128xf32>
    %37 = vector.broadcast %20 : vector<1x128xf32> to vector<8x128xf32>
    %38 = arith.addf %36, %37 : vector<8x128xf32>
    %c0_27 = arith.constant 0 : index
    %c0_28 = arith.constant 0 : index
    %39 = vector.load %arg10[%c0_27, %c0_28] : memref<8x128xf32, #tpu.memory_space<vmem>>, vector<8x128xf32>
    tpu.vector_store %arg10[%c0_27, %c0_28], %38 {strides = array<i32>} : memref<8x128xf32, #tpu.memory_space<vmem>>, vector<8x128xf32>,
    return
  }
  func.func @transform_0(%arg0: i32) -> (i32, i32) {
    %c0_i32 = arith.constant 0 : i32
    %c0_i32_0 = arith.constant 0 : i32
    return %arg0, %c0_i32 : i32, i32
  }
  func.func @transform_1(%arg0: i32) -> (i32, i32) {
    %c0_i32 = arith.constant 0 : i32
    %c0_i32_0 = arith.constant 0 : i32
    %c0_i32_1 = arith.constant 0 : i32
    return %c0_i32, %c0_i32_0 : i32, i32
  }
  func.func @transform_2(%arg0: i32) -> (i32, i32) {
    %c0_i32 = arith.constant 0 : i32
    %c0_i32_0 = arith.constant 0 : i32
    %c0_i32_1 = arith.constant 0 : i32
    return %c0_i32, %c0_i32_0 : i32, i32
  }
  func.func @transform_3(%arg0: i32) -> (i32, i32) {
    %c0_i32 = arith.constant 0 : i32
    %c0_i32_0 = arith.constant 0 : i32
    %c0_i32_1 = arith.constant 0 : i32
    return %c0_i32, %c0_i32_0 : i32, i32
  }
  func.func @transform_4(%arg0: i32) -> (i32, i32) {
    %c0_i32 = arith.constant 0 : i32
    %c0_i32_0 = arith.constant 0 : i32
    %c0_i32_1 = arith.constant 0 : i32
    return %c0_i32, %c0_i32_0 : i32, i32
  }
  func.func @transform_5(%arg0: i32) -> (i32, i32) {
    %c0_i32 = arith.constant 0 : i32
    %c0_i32_0 = arith.constant 0 : i32
    %c0_i32_1 = arith.constant 0 : i32
    return %c0_i32, %c0_i32_0 : i32, i32
  }
  func.func @transform_6(%arg0: i32) -> (i32, i32) {
    %c0_i32 = arith.constant 0 : i32
    %c0_i32_0 = arith.constant 0 : i32
    %c0_i32_1 = arith.constant 0 : i32
    return %c0_i32, %c0_i32_0 : i32, i32
  }
  func.func @transform_7(%arg0: i32) -> (i32, i32) {
    %c0_i32 = arith.constant 0 : i32
    %c0_i32_0 = arith.constant 0 : i32
    %c0_i32_1 = arith.constant 0 : i32
    return %c0_i32, %c0_i32_0 : i32, i32
  }
  func.func @transform_8(%arg0: i32) -> (i32, i32) {
    %c0_i32 = arith.constant 0 : i32
    %c0_i32_0 = arith.constant 0 : i32
    %c0_i32_1 = arith.constant 0 : i32
    return %c0_i32, %c0_i32_0 : i32, i32
  }
  func.func @transform_9(%arg0: i32) -> (i32, i32) {
    %c0_i32 = arith.constant 0 : i32
    %c0_i32_0 = arith.constant 0 : i32
    return %arg0, %c0_i32 : i32, i32
  }
}

</mosaic_0001>

<bundles_post_ra>
// kernel: _lambda_.1
= control target key start
LH: loop header
LB: loop body
LE: loop exit
PB: predicated region body
PF: predicated region fallthrough
CT: control target
= control target key end

     0   :  { %14 = vsyncpa [#allocation3], 0  ;;  %s1088_s0 = inlined_call_operand.vmem [shape: f32[8,128], index: 0, kind: input, shape index: {}]   ;;  %s1089_s1 = inlined_call_operand.hbm [shape: f32[128,128], index: 1, kind: input, shape index: {}]   ;;  %s1090_s2 = inlined_call_operand.vmem [shape: f32[1,128], index: 2, kind: input, shape index: {}]   ;;  %s1091_s3 = inlined_call_operand.hbm [shape: f32[128,128], index: 3, kind: input, shape index: {}]   ;;  %s1092_s4 = inlined_call_operand.vmem [shape: f32[1,128], index: 4, kind: input, shape index: {}]   ;;  %s1093_s5 = inlined_call_operand.hbm [shape: f32[128,128], index: 5, kind: input, shape index: {}]   ;;  %s1094_s6 = inlined_call_operand.vmem [shape: f32[1,128], index: 6, kind: input, shape index: {}]   ;;  %s1095_s7 = inlined_call_operand.hbm [shape: f32[128,128], index: 7, kind: input, shape index: {}]   ;;  %s1096_s8 = inlined_call_operand.vmem [shape: f32[1,128], index: 8, kind: input, shape index: {}]   ;;  %s1097_s9 = inlined_call_operand.vmem [shape: f32[8,128], index: 9, kind: output, shape index: {}]  }
   0x1   :  { %15 = vsyncpa [#allocation5], 0 }
   0x2   :  { %16 = vsyncpa [#allocation8], 0  ;;  %s896_s30 = smov [#allocation4]   ;;  %s897_s11 = smov [#allocation2]  }
   0x3   :  { %s38_s10 = sshll.u32 %s896_s30, 4  ;;  %s24_s12 = sshll.u32 %s897_s11, 4  ;;  %s39_s10 = int_to_ptr.vmem [resolvable:$true] %s38_s10  ;;  %s956_s12 = int_to_ptr.vmem [resolvable:$true] %s24_s12 }
   0x4   :  { %s802_s15 = scalar_lea.hbm %s1091_s3, 2048 }
   0x5   :  { %p803_p0 = scmp.ne.s32.totalorder %s1091_s3, %s802_s15  ;;  %p806_p1 = scmp.lt.u32.totalorder %s802_s15, %s1091_s3 }
   0x7   :  { %p808_p2 = pnand %p806_p1, %p803_p0 }
   0x9   :  { %811 = shalt.err (!%p808_p2)
}
   0xa   :  { %s812_s20 = scalar_lea.vmem %s39_s10, 2048  ;;  %p817_p4 = scmp.lt.s32.totalorder %s39_s10, %s39_s10 }
   0xb   :  { %p813_p3 = scmp.ne.s32.totalorder %s39_s10, %s812_s20  ;;  %p818_p5 = scmp.lt.s32.totalorder %s812_s20, %s812_s20 }
   0xd   :  { %p819_p6 = por %p818_p5, %p817_p4 }
   0xf   :  { %p820_p7 = pnand %p819_p6, %p813_p3 }
  0x11   :  { %823 = shalt.err (!%p820_p7)
}
  0x12   :  { %s898_s21 = smov 128   ;;  %s899_s22 = smov 8  }
  0x13   :  { %44 = dma.hbm_to_vmem [thread:$0]  %s1091_s3, 2048, %s39_s10, [#allocation5], %s898_s21, %s898_s21, %s899_s22  }
  0x14   :  { %s824_s27 = scalar_lea.hbm %s1089_s1, 2048 }
  0x15   :  { %p825_p8 = scmp.ne.s32.totalorder %s1089_s1, %s824_s27  ;;  %p828_p9 = scmp.lt.u32.totalorder %s824_s27, %s1089_s1 }
  0x17   :  { %p830_p10 = pnand %p828_p9, %p825_p8 }
  0x19   :  { %833 = shalt.err (!%p830_p10)
}
  0x1a   :  { %s834_s13 = scalar_lea.vmem %s956_s12, 2048  ;;  %p839_p12 = scmp.lt.s32.totalorder %s956_s12, %s956_s12 }
  0x1b   :  { %p835_p11 = scmp.ne.s32.totalorder %s956_s12, %s834_s13  ;;  %p840_p13 = scmp.lt.s32.totalorder %s834_s13, %s834_s13 }
  0x1d   :  { %p841_p0 = por %p840_p13, %p839_p12 }
  0x1f   :  { %p842_p1 = pnand %p841_p0, %p835_p11 }
  0x21   :  { %845 = shalt.err (!%p842_p1)
}
  0x22   :  { %30 = dma.hbm_to_vmem [thread:$0]  %s1089_s1, 2048, %s956_s12, [#allocation3], %s898_s21, %s898_s21, %s899_s22  }
  0x23   :  { %s900_s14 = smov [#allocation6]   ;;  %s901_s16 = smov [#allocation7]  }
  0x24   :  { %s52_s15 = sshll.u32 %s900_s14, 4  ;;  %s66_s17 = sshll.u32 %s901_s16, 4  ;;  %s53_s15 = int_to_ptr.vmem [resolvable:$true] %s52_s15  ;;  %s993_s17 = int_to_ptr.vmem [resolvable:$true] %s66_s17 }
  0x25   :  { %s846_s20 = scalar_lea.hbm %s1093_s5, 2048 }
  0x26   :  { %p847_p2 = scmp.ne.s32.totalorder %s1093_s5, %s846_s20  ;;  %p850_p3 = scmp.lt.u32.totalorder %s846_s20, %s1093_s5 }
  0x28   :  { %p852_p4 = pnand %p850_p3, %p847_p2 }
  0x2a   :  { %855 = shalt.err (!%p852_p4)
}
  0x2b   :  { %s856_s1 = scalar_lea.vmem %s53_s15, 2048  ;;  %p861_p6 = scmp.lt.s32.totalorder %s53_s15, %s53_s15 }
  0x2c   :  { %p857_p5 = scmp.ne.s32.totalorder %s53_s15, %s856_s1  ;;  %p862_p7 = scmp.lt.s32.totalorder %s856_s1, %s856_s1 }
  0x2e   :  { %p863_p8 = por %p862_p7, %p861_p6 }
  0x30   :  { %p864_p9 = pnand %p863_p8, %p857_p5 }
  0x32   :  { %867 = shalt.err (!%p864_p9)
}
  0x33   :  { %58 = dma.hbm_to_vmem [thread:$0]  %s1093_s5, 2048, %s53_s15, [#allocation5], %s898_s21, %s898_s21, %s899_s22  }
  0x34   :  { %s868_s30 = scalar_lea.hbm %s1095_s7, 2048 }
  0x35   :  { %p869_p10 = scmp.ne.s32.totalorder %s1095_s7, %s868_s30  ;;  %p872_p11 = scmp.lt.u32.totalorder %s868_s30, %s1095_s7 }
  0x37   :  { %p874_p12 = pnand %p872_p11, %p869_p10 }
  0x39   :  { %877 = shalt.err (!%p874_p12)
}
  0x3a   :  { %s878_s14 = scalar_lea.vmem %s993_s17, 2048  ;;  %p883_p0 = scmp.lt.s32.totalorder %s993_s17, %s993_s17 }
  0x3b   :  { %p879_p13 = scmp.ne.s32.totalorder %s993_s17, %s878_s14  ;;  %p884_p1 = scmp.lt.s32.totalorder %s878_s14, %s878_s14 }
  0x3d   :  { %p885_p2 = por %p884_p1, %p883_p0 }
  0x3f   :  { %p886_p3 = pnand %p885_p2, %p879_p13 }
  0x41   :  { %889 = shalt.err (!%p886_p3)
}
  0x42   :  { %72 = dma.hbm_to_vmem [thread:$0]  %s1095_s7, 2048, %s993_s17, [#allocation8], %s898_s21, %s898_s21, %s899_s22  }
  0x43   :  { %890 = dma.done.wait [#allocation3], 2048  }
  0x44   :  { %891 = vsyncadd [#allocation3], 4294965248 }
  0x45   :  { %892 = dma.done.wait [#allocation5], 4096  }
  0x46   :  { %893 = vsyncadd [#allocation5], 4294963200 }
  0x47   :  { %894 = dma.done.wait [#allocation8], 2048  }
  0x48   :  { %895 = vsyncadd [#allocation8], 4294965248  ;;  %v902_v0 = vmov 0.0|0.0   ;;  %vm903_vm0 = vmmov 0   ;;  %v904_v1 = vmov 0.0   ;;  %v88_v2 = vld [vmem:[#allocation2] sm:$0xff] }
  0x49   :  { %694 = vmatprep.subr.bf16.mxu0 %v902_v0  ;;  %586 = vmatprep.mubr.msk.f32.mxu0 %vm903_vm0, %v904_v1  ;;  %v89_v3 = vld [vmem:[#allocation2 + $0x8] sm:$0xff]  ;;  %v90_v4 = vld [vmem:[#allocation2 + $0x10] sm:$0xff]  ;;  %v91_v6 = vld [vmem:[#allocation2 + $0x18] sm:$0xff]  ;;  %s905_s17 = smov 64  }
  0x4a   :  { %718 = vmatprep.subr.bf16.mxu1 %v902_v0  ;;  %621 = vmatprep.mubr.msk.f32.mxu1 %vm903_vm0, %v904_v1  ;;  %v695_v5 = vpack.c.bf16 %v89_v3, %v88_v2  ;;  %v698_v7 = vpack.c.bf16 %v91_v6, %v90_v4  ;;  %v92_v8 = vld [vmem:[#allocation2 + $0x20] sm:$0xff]  ;;  %v93_v9 = vld [vmem:[#allocation2 + $0x28] sm:$0xff]  ;;  %v184_v12 = vld [vmem:[#allocation4 + $0x10] sm:$0xff] }
  0x4b   :  { %v182_v10 = vld [vmem:[#allocation4] sm:$0xff]  ;;  %v183_v11 = vld [vmem:[#allocation4 + $0x8] sm:$0xff]  ;;  %v185_v13 = vld [vmem:[#allocation4 + $0x18] sm:$0xff]  ;;  %v701_v14 = vpack.c.bf16 %v93_v9, %v92_v8 }
  0x4c   :  { %696 = vmatpush3.bf16.msra.mxu0 %v695_v5  ;;  %v719_v15 = vpack.c.bf16 %v183_v11, %v182_v10  ;;  %v94_v16 = vld [vmem:[#allocation2 + $0x30] sm:$0xff]  ;;  %v95_v17 = vld [vmem:[#allocation2 + $0x38] sm:$0xff]  ;;  %v722_v18 = vpack.c.bf16 %v185_v13, %v184_v12  ;;  %v186_v19 = vld [vmem:[#allocation4 + $0x20] sm:$0xff] }
  0x4d   :  { %697 = vmatprep.subr.bf16.mxu0 %v902_v0  ;;  %v187_v20 = vld [vmem:[#allocation4 + $0x28] sm:$0xff]  ;;  %v704_v21 = vpack.c.bf16 %v95_v17, %v94_v16  ;;  %v96_v22 = vld [vmem:[#allocation2 + $0x40] sm:$0xff]  ;;  %v188_v25 = vld [vmem:[#allocation4 + $0x30] sm:$0xff] }
  0x4e   :  { %720 = vmatpush3.bf16.msra.mxu1 %v719_v15  ;;  %v97_v23 = vld [vmem:[#allocation2 + $0x48] sm:$0xff]  ;;  %v725_v24 = vpack.c.bf16 %v187_v20, %v186_v19  ;;  %v189_v26 = vld [vmem:[#allocation4 + $0x38] sm:$0xff]  ;;  %v98_v28 = vld [vmem:[#allocation2 + $0x50] sm:$0xff] }
  0x4f   :  { %721 = vmatprep.subr.bf16.mxu1 %v902_v0  ;;  %v707_v27 = vpack.c.bf16 %v97_v23, %v96_v22  ;;  %v99_v29 = vld [vmem:[#allocation2 + $0x58] sm:$0xff]  ;;  %v728_v30 = vpack.c.bf16 %v189_v26, %v188_v25  ;;  %v190_v31 = vld [vmem:[#allocation4 + $0x40] sm:$0xff]  ;;  %v191_v32 = vld [vmem:[#allocation4 + $0x48] sm:$0xff] }
  0x50   :  { %699 = vmatpush3.bf16.msra.mxu0 %v698_v7  ;;  %v710_v33 = vpack.c.bf16 %v99_v29, %v98_v28  ;;  %v100_v34 = vld [vmem:[#allocation2 + $0x60] sm:$0xff]  ;;  %v101_v35 = vld [vmem:[#allocation2 + $0x68] sm:$0xff]  ;;  %v731_v36 = vpack.c.bf16 %v191_v32, %v190_v31  ;;  %v192_v37 = vld [vmem:[#allocation4 + $0x50] sm:$0xff] }
  0x51   :  { %700 = vmatprep.subr.bf16.mxu0 %v902_v0  ;;  %v193_v38 = vld [vmem:[#allocation4 + $0x58] sm:$0xff]  ;;  %v713_v39 = vpack.c.bf16 %v101_v35, %v100_v34  ;;  %v102_v40 = vld [vmem:[#allocation2 + $0x70] sm:$0xff]  ;;  %v194_v43 = vld [vmem:[#allocation4 + $0x60] sm:$0xff] }
  0x52   :  { %723 = vmatpush3.bf16.msra.mxu1 %v722_v18  ;;  %v103_v41 = vld [vmem:[#allocation2 + $0x78] sm:$0xff]  ;;  %v734_v42 = vpack.c.bf16 %v193_v38, %v192_v37  ;;  %v195_v44 = vld [vmem:[#allocation4 + $0x68] sm:$0xff]  ;;  %v87_v47 = vld [vmem:[%s1088_s0] sm:$0xff] }
  0x53   :  { %724 = vmatprep.subr.bf16.mxu1 %v902_v0  ;;  %v716_v45 = vpack.c.bf16 %v103_v41, %v102_v40  ;;  %v737_v46 = vpack.c.bf16 %v195_v44, %v194_v43  ;;  %v196_v48 = vld [vmem:[#allocation4 + $0x70] sm:$0xff]  ;;  %v197_v49 = vld [vmem:[#allocation4 + $0x78] sm:$0xff]  ;;  %v481_v51 = vld [vmem:[%s1090_s2] ss:$0 sm:$0xff] }
  0x54   :  { %702 = vmatpush3.bf16.msra.mxu0 %v701_v14  ;;  %v740_v50 = vpack.c.bf16 %v197_v49, %v196_v48  ;;  %v279_v56 = vld [vmem:[#allocation6] sm:$0xff]  ;;  %v280_v57 = vld [vmem:[#allocation6 + $0x8] sm:$0xff]  ;;  %v281_v58 = vld [vmem:[#allocation6 + $0x10] sm:$0xff] }
  0x55   :  { %703 = vmatprep.subr.bf16.mxu0 %v902_v0  ;;  %v743_v59 = vpack.c.bf16 %v280_v57, %v279_v56  ;;  %v282_v60 = vld [vmem:[#allocation6 + $0x18] sm:$0xff]  ;;  %v283_v62 = vld [vmem:[#allocation6 + $0x20] sm:$0xff]  ;;  %v284_v63 = vld [vmem:[#allocation6 + $0x28] sm:$0xff] }
  0x56   :  { %726 = vmatpush3.bf16.msra.mxu1 %v725_v24  ;;  %v746_v61 = vpack.c.bf16 %v282_v60, %v281_v58  ;;  %v749_v2 = vpack.c.bf16 %v284_v63, %v283_v62  ;;  %v285_v3 = vld [vmem:[#allocation6 + $0x30] sm:$0xff]  ;;  %v286_v4 = vld [vmem:[#allocation6 + $0x38] sm:$0xff]  ;;  %v288_v6 = vld [vmem:[#allocation6 + $0x48] sm:$0xff] }
  0x57   :  { %727 = vmatprep.subr.bf16.mxu1 %v902_v0  ;;  %v752_v5 = vpack.c.bf16 %v286_v4, %v285_v3  ;;  %v289_v8 = vld [vmem:[#allocation6 + $0x50] sm:$0xff]  ;;  %v290_v9 = vld [vmem:[#allocation6 + $0x58] sm:$0xff]  ;;  %v291_v11 = vld [vmem:[#allocation6 + $0x60] sm:$0xff] }
  0x58   :  { %705 = vmatpush3.bf16.msra.mxu0 %v704_v21  ;;  %v758_v10 = vpack.c.bf16 %v290_v9, %v289_v8  ;;  %v292_v12 = vld [vmem:[#allocation6 + $0x68] sm:$0xff]  ;;  %v293_v14 = vld [vmem:[#allocation6 + $0x70] sm:$0xff]  ;;  %v294_v15 = vld [vmem:[#allocation6 + $0x78] sm:$0xff] }
  0x59   :  { %706 = vmatprep.subr.bf16.mxu0 %v902_v0  ;;  %v761_v13 = vpack.c.bf16 %v292_v12, %v291_v11  ;;  %v764_v16 = vpack.c.bf16 %v294_v15, %v293_v14  ;;  %v296_v17 = vld [vmem:[#allocation7] sm:$0xff]  ;;  %v297_v18 = vld [vmem:[#allocation7 + $0x8] sm:$0xff]  ;;  %v298_v19 = vld [vmem:[#allocation7 + $0x10] sm:$0xff] }
  0x5a   :  { %729 = vmatpush3.bf16.msra.mxu1 %v728_v30  ;;  %v767_v20 = vpack.c.bf16 %v297_v18, %v296_v17  ;;  %v299_v21 = vld [vmem:[#allocation7 + $0x18] sm:$0xff]  ;;  %v482_v23 = vld [vmem:[%s1092_s4] ss:$0 sm:$0xff]  ;;  %v301_v31 = vld [vmem:[#allocation7 + $0x28] sm:$0xff] }
  0x5b   :  { %730 = vmatprep.subr.bf16.mxu1 %v902_v0  ;;  %v770_v22 = vpack.c.bf16 %v299_v21, %v298_v19  ;;  %v300_v30 = vld [vmem:[#allocation7 + $0x20] sm:$0xff]  ;;  %v303_v34 = vld [vmem:[#allocation7 + $0x38] sm:$0xff]  ;;  %v305_v37 = vld [vmem:[#allocation7 + $0x48] sm:$0xff] }
  0x5c   :  { %708 = vmatpush3.bf16.msra.mxu0 %v707_v27  ;;  %v773_v32 = vpack.c.bf16 %v301_v31, %v300_v30  ;;  %v307_v40 = vld [vmem:[#allocation7 + $0x58] sm:$0xff]  ;;  %v309_v43 = vld [vmem:[#allocation7 + $0x68] sm:$0xff]  ;;  %v483_v48 = vld [vmem:[%s1094_s6] ss:$0 sm:$0xff] }
  0x5d   :  { %709 = vmatprep.subr.bf16.mxu0 %v902_v0  ;;  %v485_v58 = vld [vmem:[%s1096_s8] ss:$0 sm:$0xff] }
  0x5e   :  { %732 = vmatpush3.bf16.msra.mxu1 %v731_v36  ;;  %v304_v36 = vld [vmem:[#allocation7 + $0x40] sm:$0xff] }
  0x5f   :  { %733 = vmatprep.subr.bf16.mxu1 %v902_v0  ;;  %v779_v38 = vpack.c.bf16 %v305_v37, %v304_v36 }
  0x60   :  { %711 = vmatpush3.bf16.msra.mxu0 %v710_v33  ;;  %v302_v33 = vld [vmem:[#allocation7 + $0x30] sm:$0xff] }
  0x61   :  { %712 = vmatprep.subr.bf16.mxu0 %v902_v0  ;;  %v776_v35 = vpack.c.bf16 %v303_v34, %v302_v33 }
  0x62   :  { %735 = vmatpush3.bf16.msra.mxu1 %v734_v42  ;;  %v308_v42 = vld [vmem:[#allocation7 + $0x60] sm:$0xff] }
  0x63   :  { %736 = vmatprep.subr.bf16.mxu1 %v902_v0  ;;  %v785_v44 = vpack.c.bf16 %v309_v43, %v308_v42 }
  0x64   :  { %714 = vmatpush3.bf16.msra.mxu0 %v713_v39  ;;  %v306_v39 = vld [vmem:[#allocation7 + $0x50] sm:$0xff] }
  0x65   :  { %715 = vmatprep.subr.bf16.mxu0 %v902_v0  ;;  %v782_v41 = vpack.c.bf16 %v307_v40, %v306_v39 }
  0x66   :  { %738 = vmatpush3.bf16.msra.mxu1 %v737_v46  ;;  %v311_v46 = vld [vmem:[#allocation7 + $0x78] sm:$0xff] }
  0x67   :  { %739 = vmatprep.subr.bf16.mxu1 %v902_v0 }
  0x68   :  { %717 = vmatpush3.bf16.msra.mxu0 %v716_v45  ;;  %v310_v45 = vld [vmem:[#allocation7 + $0x70] sm:$0xff] }
  0x69   :  { %742 = vmatprep.subr.bf16.mxu0 %v902_v0 }
  0x6a   :  { %741 = vmatpush3.bf16.msra.mxu1 %v740_v50 }
  0x6b   :  { %587 = vmatmul.mubr.f32.vlgmr.msra.gmra.mrb[0].mxu0 %v87_v47  ;;  %766 = vmatprep.subr.bf16.mxu1 %v902_v0  ;;  %v788_v47 = vpack.c.bf16 %v311_v46, %v310_v45 }
  0x6c   :  { %656 = vmatprep.mubr.msk.f32.mxu0 %vm903_vm0, %v904_v1  ;;  %744 = vmatpush3.bf16.msra.mxu0 %v743_v59 }
  0x6d   :  { %745 = vmatprep.subr.bf16.mxu0 %v902_v0 }
  0x70   :  { %747 = vmatpush3.bf16.msra.mxu0 %v746_v61 }
  0x71   :  { %748 = vmatprep.subr.bf16.mxu0 %v902_v0 }
  0x74   :  { %750 = vmatpush3.bf16.msra.mxu0 %v749_v2 }
  0x75   :  { %751 = vmatprep.subr.bf16.mxu0 %v902_v0 }
  0x78   :  { %753 = vmatpush3.bf16.msra.mxu0 %v752_v5 }
  0x79   :  { %754 = vmatprep.subr.bf16.mxu0 %v902_v0 }
 0x13e   :  { %v177_v52 = vpop.f32.mrb[0].mxu0 }
 0x13f   :  { %v178_v53 = vadd.f32 %v481_v51, %v177_v52  ;;  %v588_v54 = vpop.f32.mrb[1].mxu0 }
 0x141   :  { %v181_v55 = vmax.f32 %v178_v53, 0.0 }
 0x143   :  { %622 = vmatmul.mubr.f32.vlgmr.msra.gmra.mrb[0].mxu1 %v181_v55 }
 0x144   :  { %691 = vmatprep.mubr.msk.f32.mxu1 %vm903_vm0, %v904_v1  ;;  %v287_v1 = vld [vmem:[#allocation6 + $0x40] sm:$0xff]  ;;  %768 = vmatpush3.bf16.msra.mxu1 %v767_v20 }
 0x145   :  { %v755_v7 = vpack.c.bf16 %v288_v6, %v287_v1  ;;  %769 = vmatprep.subr.bf16.mxu1 %v902_v0 }
 0x147   :  { %756 = vmatpush3.bf16.msra.mxu0 %v755_v7 }
 0x148   :  { %757 = vmatprep.subr.bf16.mxu0 %v902_v0  ;;  %771 = vmatpush3.bf16.msra.mxu1 %v770_v22 }
 0x149   :  { %772 = vmatprep.subr.bf16.mxu1 %v902_v0 }
 0x14b   :  { %759 = vmatpush3.bf16.msra.mxu0 %v758_v10 }
 0x14c   :  { %760 = vmatprep.subr.bf16.mxu0 %v902_v0  ;;  %774 = vmatpush3.bf16.msra.mxu1 %v773_v32 }
 0x14d   :  { %775 = vmatprep.subr.bf16.mxu1 %v902_v0 }
 0x14f   :  { %762 = vmatpush3.bf16.msra.mxu0 %v761_v13 }
 0x150   :  { %763 = vmatprep.subr.bf16.mxu0 %v902_v0  ;;  %777 = vmatpush3.bf16.msra.mxu1 %v776_v35 }
 0x151   :  { %778 = vmatprep.subr.bf16.mxu1 %v902_v0 }
 0x153   :  { %765 = vmatpush3.bf16.msra.mxu0 %v764_v16 }
 0x154   :  { %780 = vmatpush3.bf16.msra.mxu1 %v779_v38 }
 0x155   :  { %781 = vmatprep.subr.bf16.mxu1 %v902_v0 }
 0x158   :  { %783 = vmatpush3.bf16.msra.mxu1 %v782_v41 }
 0x159   :  { %784 = vmatprep.subr.bf16.mxu1 %v902_v0 }
 0x15c   :  { %786 = vmatpush3.bf16.msra.mxu1 %v785_v44 }
 0x15d   :  { %787 = vmatprep.subr.bf16.mxu1 %v902_v0 }
 0x160   :  { %789 = vmatpush3.bf16.msra.mxu1 %v788_v47 }
 0x216   :  { %v271_v24 = vpop.f32.mrb[0].mxu1 }
 0x217   :  { %v272_v25 = vadd.f32 %v482_v23, %v271_v24  ;;  %v623_v26 = vpop.f32.mrb[1].mxu1 }
 0x219   :  { %v275_v27 = vmax.f32 %v272_v25, 0.0 }
 0x21b   :  { %276 = vrot.lane.b32.xlu0 %v275_v27, %s905_s17 }
 0x28d   :  { %v277_v28 = vpop.permute.xlu0 %276 }
 0x28e   :  { %v278_v29 = vmax.f32 %v275_v27, %v277_v28 }
 0x290   :  { %657 = vmatmul.mubr.f32.vlgmr.msra.gmra.mrb[2].mxu0 %v278_v29 }
 0x363   :  { %v385_v49 = vpop.f32.mrb[2].mxu0 }
 0x364   :  { %v386_v50 = vadd.f32 %v483_v48, %v385_v49  ;;  %v658_v51 = vpop.f32.mrb[3].mxu0 }
 0x366   :  { %v390_v52 = vmin.f32 %v386_v50, 0.0  ;;  %vm389_vm1 = vcmp.gt.f32.partialorder %v386_v50, 0.0 }
 0x368   :  { %v391_v53 = vmul.f32 1.442695, %v390_v52 }
 0x36a   :  { %800 = vpow2.f32 %v391_v53 }
 0x374   :  { %v801_v54 = vpop.eup %800 }
 0x375   :  { %v484_v55 = vadd.f32 -1.0, %v801_v54 }
 0x377   :  { %v394_v56 = vmul.f32 1.6732632, %v484_v55 }
 0x379   :  { %v395_v57 = vsel %vm389_vm1, %v386_v50, %v394_v56 }
 0x37a   :  { %v396_v0 = vmul.f32 1.050701, %v395_v57 }
 0x37c   :  { %692 = vmatmul.mubr.f32.vlgmr.msra.gmra.mrb[2].mxu1 %v396_v0 }
 0x44f   :  { %v469_v59 = vpop.f32.mrb[2].mxu1 }
 0x450   :  { %v470_v60 = vadd.f32 %v485_v58, %v469_v59  ;;  %v693_v61 = vpop.f32.mrb[3].mxu1 }
 0x452   :  { %473 = vst [vmem:[%s1097_s9] sm:$0xff] %v470_v60 }
 0x453   :  { %478 = vsyncpa [#allocation3], 1 }
 0x454   :  { %479 = vsyncpa [#allocation5], 1 }
 0x455   :  { %480 = vsyncpa [#allocation8], 1 }

</bundles_post_ra>
